<compile_context>
chip_gen: v6e
topology: v6e:2x2x1
jax: 0.10.0
libtpu: 0.0.40
codegen_flags: <defaults>
</compile_context>

<pallas_src>
import functools

import jax
import jax.numpy as jnp
from jax.experimental import pallas as pl
from jax.experimental.pallas import tpu as pltpu

_MIB = 1024 * 1024


# --------------------------------------------------------------------------------------
# Kernels
# --------------------------------------------------------------------------------------
def _layernorm_rows(r, gamma, beta, eps):
    """LayerNorm over the last dim with single-pass statistics (one XLU reduction pair)."""
    n = r.shape[-1]
    s1 = jnp.sum(r, axis=-1, keepdims=True)
    s2 = jnp.sum(r * r, axis=-1, keepdims=True)
    mean = s1 * (1.0 / n)
    var = s2 * (1.0 / n) - mean * mean
    inv = jax.lax.rsqrt(var + eps)  # EUP
    return (r - mean) * inv * gamma + beta


def _ffn_resident_kernel(x_ref, w1_ref, b1_ref, w2_ref, b2_ref, g_ref, be_ref,
                         out_ref, *, eps):
    """One grid step = one (TM, E) row tile; both weights fully VMEM-resident."""
    x_in = x_ref[...]
    x = x_in.astype(jnp.float32)

    # linear1 + ReLU  (operands in compute dtype, f32 accumulation)
    h = jnp.dot(x_in.astype(w1_ref.dtype), w1_ref[...],
                preferred_element_type=jnp.float32)
    h = jnp.maximum(h + b1_ref[...], 0.0)

    # TODO(synk): training-mode dropout (p > 0) not implemented; module default p=0.0.

    # linear2
    y = jnp.dot(h.astype(w2_ref.dtype), w2_ref[...],
                preferred_element_type=jnp.float32)

    # residual + LayerNorm (all f32)
    r = x + y + b2_ref[...]
    out_ref[...] = _layernorm_rows(r, g_ref[...], be_ref[...], eps).astype(out_ref.dtype)


def _ffn_stream_kernel(x_ref, w1_ref, b1_ref, w2_ref, b2_ref, g_ref, be_ref,
                       out_ref, acc_ref, *, eps):
    """Grid = (row tiles, hidden chunks). Streams W1^T/(E,tH) and W2^T/(tH,E) blocks
    and accumulates the second matmul into a VMEM f32 accumulator."""
    k = pl.program_id(1)

    @pl.when(k == 0)
    def _():
        acc_ref[...] = jnp.zeros_like(acc_ref)

    x_in = x_ref[...]
    h = jnp.dot(x_in.astype(w1_ref.dtype), w1_ref[...],
                preferred_element_type=jnp.float32)
    h = jnp.maximum(h + b1_ref[...], 0.0)
    acc_ref[...] += jnp.dot(h.astype(w2_ref.dtype), w2_ref[...],
                            preferred_element_type=jnp.float32)

    @pl.when(k == pl.num_programs(1) - 1)
    def _():
        r = x_in.astype(jnp.float32) + acc_ref[...] + b2_ref[...]
        out_ref[...] = _layernorm_rows(r, g_ref[...], be_ref[...], eps).astype(out_ref.dtype)


# --------------------------------------------------------------------------------------
# Sizing helpers
# --------------------------------------------------------------------------------------
def _round_up(n, m):
    return ((n + m - 1) // m) * m


def _vmem_capacity_bytes():
    try:
        info = pltpu.get_tpu_info()
        cap = getattr(info, "vmem_capacity_bytes", None)
        if cap:
            return int(cap)
    except Exception:
        pass
    return 64 * _MIB  # conservative fallback (v7x per-core VMEM)


def _vmem_limit(need_bytes, budget_bytes):
    limit = int(need_bytes * 1.5) + 8 * _MIB   # headroom for compiler scratch / spills
    limit = max(limit, 32 * _MIB)
    return int(min(limit, budget_bytes))


def _choose_tm(M, block_rows):
    """Row tile: multiple of 8, <= block_rows, keep >=2 grid steps for megacore, and
    prefer a tile that divides the 8-padded row count (avoids pad/slice copies)."""
    M8 = _round_up(max(M, 1), 8)
    tm = min(_round_up(block_rows, 8), M8)
    if M8 // tm < 2 and M8 >= 16:        # both v7x TensorCores should get work
        tm = _round_up(-(-M8 // 2), 8)
    if M8 % tm != 0:
        best = None
        c = tm
        while c >= 8:
            if M8 % c == 0:
                best = c
                break
            c -= 8
        if best is not None and best >= max(8, tm // 2):
            tm = best
    return tm


def _stream_need_bytes(tm, th, E, itm_w, itm_x):
    return (2 * 2 * E * th * itm_w        # W1^T / W2^T chunks, double-buffered
            + 4 * tm * E * itm_x          # x + out tiles, double-buffered
            + tm * E * 4                  # f32 accumulator scratch
            + 2 * tm * th * 4)            # f32 intermediate headroom


# --------------------------------------------------------------------------------------
# pallas_call builders
# --------------------------------------------------------------------------------------
def _resident_call(x2, prep, *, tm, E, H, eps, vmem_limit, out_dtype,
                   single_buffer_weights):
    Mp = x2.shape[0]
    kernel = functools.partial(_ffn_resident_kernel, eps=eps)
    const = lambda i: (0, 0)

    def resident_spec(shape):
        if single_buffer_weights:
            # Grid-invariant block: no double buffering.
            return pl.BlockSpec(shape, const, pipeline_mode=pl.Buffered(1))
        return pl.BlockSpec(shape, const)

    call = pl.pallas_call(
        kernel,
        out_shape=jax.ShapeDtypeStruct((Mp, E), out_dtype),
        grid_spec=pltpu.PrefetchScalarGridSpec(
            num_scalar_prefetch=0,
            grid=(Mp // tm,),
            in_specs=[
                pl.BlockSpec((tm, E), lambda i: (i, 0)),   # activation rows
                resident_spec((E, H)),                     # W1^T
                resident_spec((1, H)),                     # b1
                resident_spec((H, E)),                     # W2^T
                resident_spec((1, E)),                     # b2
                resident_spec((1, E)),                     # gamma
                resident_spec((1, E)),                     # beta
            ],
            out_specs=pl.BlockSpec((tm, E), lambda i: (i, 0)),
        ),
        compiler_params=pltpu.CompilerParams(
            dimension_semantics=("parallel",),
            vmem_limit_bytes=int(vmem_limit),
        ),
    )
    return call(x2, prep["w1t"], prep["b1"], prep["w2t"], prep["b2"],
                prep["gamma"], prep["beta"])


def _stream_call(x2, prep, *, tm, th, E, H, eps, vmem_limit, out_dtype):
    Mp = x2.shape[0]
    kernel = functools.partial(_ffn_stream_kernel, eps=eps)

    call = pl.pallas_call(
        kernel,
        out_shape=jax.ShapeDtypeStruct((Mp, E), out_dtype),
        grid_spec=pltpu.PrefetchScalarGridSpec(
            num_scalar_prefetch=0,
            grid=(Mp // tm, H // th),
            in_specs=[
                pl.BlockSpec((tm, E), lambda i, k: (i, 0)),   # activation rows
                pl.BlockSpec((E, th), lambda i, k: (0, k)),   # W1^T chunk
                pl.BlockSpec((1, th), lambda i, k: (0, k)),   # b1 chunk
                pl.BlockSpec((th, E), lambda i, k: (k, 0)),   # W2^T chunk
                pl.BlockSpec((1, E), lambda i, k: (0, 0)),    # b2
                pl.BlockSpec((1, E), lambda i, k: (0, 0)),    # gamma
                pl.BlockSpec((1, E), lambda i, k: (0, 0)),    # beta
            ],
            out_specs=pl.BlockSpec((tm, E), lambda i, k: (i, 0)),
            scratch_shapes=[pltpu.VMEM((tm, E), jnp.float32)],
        ),
        compiler_params=pltpu.CompilerParams(
            dimension_semantics=("parallel", "arbitrary"),
            vmem_limit_bytes=int(vmem_limit),
        ),
    )
    return call(x2, prep["w1t"], prep["b1"], prep["w2t"], prep["b2"],
                prep["gamma"], prep["beta"])


# --------------------------------------------------------------------------------------
# Public wrapper
# --------------------------------------------------------------------------------------
def prepare_ffn_params(params, compute_dtype=jnp.bfloat16):
    """One-time parameter prep: transpose weights and cast matmul operands once."""
    H, E = params["linear1_weight"].shape
    return {
        "w1t": params["linear1_weight"].T.astype(compute_dtype),       # (E, H)
        "b1": params["linear1_bias"].reshape(1, H).astype(jnp.float32),
        "w2t": params["linear2_weight"].T.astype(compute_dtype),       # (H, E)
        "b2": params["linear2_bias"].reshape(1, E).astype(jnp.float32),
        "gamma": params["norm_weight"].reshape(1, E).astype(jnp.float32),
        "beta": params["norm_bias"].reshape(1, E).astype(jnp.float32),
    }


def feedforward_layer(x, params, *, eps=1e-5, compute_dtype=jnp.bfloat16,
                      block_rows=None, hidden_block=None, force_stream=None):
    """x: (..., E). Returns LayerNorm(x + linear2(relu(linear1(x)))) with dropout=0.0."""
    prep = params if "w1t" in params else prepare_ffn_params(params, compute_dtype)

    orig_shape = x.shape
    E = orig_shape[-1]
    H = prep["w1t"].shape[1]

    x2 = x.reshape(-1, E)
    M = x2.shape[0]

    cap = _vmem_capacity_bytes()
    budget = int(cap * 0.75)          # ~96 MiB on v5e/v6e, ~48 MiB on v7x

    if block_rows is None:
        block_rows = 512 if cap >= 128 * _MIB else 256

    tm = _choose_tm(M, block_rows)
    Mp = _round_up(M, tm)
    if Mp != M:
        x2 = jnp.pad(x2, ((0, Mp - M), (0, 0)))

    itm_x = x2.dtype.itemsize
    itm_w = prep["w1t"].dtype.itemsize
    resident_w_bytes = 2 * E * H * itm_w

    stream = (resident_w_bytes > budget // 2) if force_stream is None else bool(force_stream)

    th = None
    if stream:
        cand_list = [int(hidden_block)] if hidden_block is not None else [2048, 1024, 512, 256, 128]
        fitting = [c for c in cand_list if c % 128 == 0 and H % c == 0 and c < H]
        for c in fitting:
            if _stream_need_bytes(tm, c, E, itm_w, itm_x) <= budget:
                th = c
                break
        if th is None and fitting:
            th = fitting[-1]          # best effort: smallest valid chunk
        if th is None:
            stream = False            # cannot chunk cleanly -> weight-resident path

    small = (2 * H + 3 * E) * 4
    if stream:
        need = _stream_need_bytes(tm, th, E, itm_w, itm_x) + small
    else:
        need = (resident_w_bytes + 4 * tm * E * itm_x + tm * H * 4 + tm * E * 4 + small)
    vmem_limit = _vmem_limit(need, budget)

    eps = float(eps)
    out_dtype = x.dtype

    if stream:
        out = _stream_call(x2, prep, tm=tm, th=th, E=E, H=H, eps=eps,
                           vmem_limit=vmem_limit, out_dtype=out_dtype)
    else:
        try:
            out = _resident_call(x2, prep, tm=tm, E=E, H=H, eps=eps,
                                 vmem_limit=vmem_limit, out_dtype=out_dtype,
                                 single_buffer_weights=True)
        except Exception:
            # Older JAX without BlockSpec.pipeline_mode / Buffered(1): double-buffer.
            out = _resident_call(x2, prep, tm=tm, E=E, H=H, eps=eps,
                                 vmem_limit=vmem_limit, out_dtype=out_dtype,
                                 single_buffer_weights=False)

    if Mp != M:
        out = out[:M]
    return out.reshape(orig_shape)


# --------------------------------------------------------------------------------------
# References (pure JAX)
# --------------------------------------------------------------------------------------
def _reference(x, params, eps=1e-5):
    """f32 mirror of FeedforwardLayer.forward with dropout=0.0."""
    h = jnp.maximum(x @ params["linear1_weight"].T + params["linear1_bias"], 0.0)
    y = h @ params["linear2_weight"].T + params["linear2_bias"]
    r = x + y
    mean = r.mean(-1, keepdims=True)
    var = ((r - mean) ** 2).mean(-1, keepdims=True)
    return (r - mean) / jnp.sqrt(var + eps) * params["norm_weight"] + params["norm_bias"]


def _reference_mixed(x, params, eps=1e-5, compute_dtype=jnp.bfloat16):
    """Mirror with the kernel's mixed precision (bf16 matmul operands, f32 accumulate)."""
    w1t = params["linear1_weight"].T.astype(compute_dtype)
    w2t = params["linear2_weight"].T.astype(compute_dtype)
    h = jnp.matmul(x.astype(compute_dtype), w1t, preferred_element_type=jnp.float32)
    h = jnp.maximum(h + params["linear1_bias"].astype(jnp.float32), 0.0)
    y = jnp.matmul(h.astype(compute_dtype), w2t, preferred_element_type=jnp.float32)
    r = x.astype(jnp.float32) + y + params["linear2_bias"].astype(jnp.float32)
    n = r.shape[-1]
    mean = jnp.sum(r, -1, keepdims=True) / n
    var = jnp.sum(r * r, -1, keepdims=True) / n - mean * mean
    out = (r - mean) * jax.lax.rsqrt(var + eps) * params["norm_weight"] + params["norm_bias"]
    return out.astype(x.dtype)


def _make_params(keys, E, H):
    bound1 = (6.0 / (E + H)) ** 0.5
    bound2 = (6.0 / (H + E)) ** 0.5
    return {
        "linear1_weight": jax.random.uniform(keys[0], (H, E), jnp.float32, -bound1, bound1),
        "linear1_bias": jax.random.uniform(keys[1], (H,), jnp.float32, -1.0 / E ** 0.5, 1.0 / E ** 0.5),
        "linear2_weight": jax.random.uniform(keys[2], (E, H), jnp.float32, -bound2, bound2),
        "linear2_bias": jax.random.uniform(keys[3], (E,), jnp.float32, -1.0 / H ** 0.5, 1.0 / H ** 0.5),
        "norm_weight": jnp.ones((E,), jnp.float32),
        "norm_bias": jnp.zeros((E,), jnp.float32),
    }


if __name__ == "__main__":
    key0 = jax.random.PRNGKey(0)
    ks = jax.random.split(key0, 10)

    # ---- Test A: weight-resident path (default), small shapes: seq=8, batch=2, E=32, H=64
    L, N, E, H = 8, 2, 32, 64
    params = _make_params(ks[0:4], E, H)
    x = jax.random.normal(ks[4], (L, N, E), jnp.float32)

    prep = prepare_ffn_params(params)                       # bf16 compute dtype (default)
    out_a = jax.block_until_ready(feedforward_layer(x, prep))
    assert out_a.shape == x.shape

    ref_mixed = _reference_mixed(x, params)
    ref_f32 = _reference(x, params)
    assert jnp.allclose(out_a, ref_mixed, atol=1e-3, rtol=1e-3), \
        float(jnp.max(jnp.abs(out_a - ref_mixed)))
    assert jnp.allclose(out_a, ref_f32, atol=5e-2, rtol=5e-2), \
        float(jnp.max(jnp.abs(out_a - ref_f32)))

    # ---- Test B: H-streamed path (forced) with accumulator: E=32, H=256, tH=128, M=32
    E2, H2 = 32, 256
    params2 = _make_params(ks[5:9], E2, H2)
    x2 = jax.random.normal(ks[9], (8, 4, E2), jnp.float32)

    prep2 = prepare_ffn_params(params2)
    out_b = jax.block_until_ready(
        feedforward_layer(x2, prep2, force_stream=True, hidden_block=128))
    assert out_b.shape == x2.shape

    ref2_mixed = _reference_mixed(x2, params2)
    ref2_f32 = _reference(x2, params2)
    assert jnp.allclose(out_b, ref2_mixed, atol=1e-3, rtol=1e-3), \
        float(jnp.max(jnp.abs(out_b - ref2_mixed)))
    assert jnp.allclose(out_b, ref2_f32, atol=5e-2, rtol=5e-2), \
        float(jnp.max(jnp.abs(out_b - ref2_f32)))

    print("KERNEL_OK")
</pallas_src>

<mosaic_0001>
module attributes {stable_mosaic.version = 11 : i64} {
  func.func @_ffn_resident_kernel(%arg0: i32, %arg1: memref<8x32xf32, #tpu.memory_space<vmem>>, %arg2: memref<32x64xbf16, #tpu.memory_space<vmem>>, %arg3: memref<1x64xf32, #tpu.memory_space<vmem>>, %arg4: memref<64x32xbf16, #tpu.memory_space<vmem>>, %arg5: memref<1x32xf32, #tpu.memory_space<vmem>>, %arg6: memref<1x32xf32, #tpu.memory_space<vmem>>, %arg7: memref<1x32xf32, #tpu.memory_space<vmem>>, %arg8: memref<8x32xf32, #tpu.memory_space<vmem>>) attributes {dimension_semantics = [#tpu.dimension_semantics<parallel>], iteration_bounds = array<i64: 2>, scalar_prefetch = 0 : i64, scratch_operands = 0 : i64, tpu.core_type = #tpu.core_type<tc>, window_params = [{transform_indices = @transform_0, window_bounds = array<i64: 8, 32>}, {pipeline_mode = #tpu.pipeline_mode<synchronous>, transform_indices = @transform_1, window_bounds = array<i64: 32, 64>}, {pipeline_mode = #tpu.pipeline_mode<synchronous>, transform_indices = @transform_2, window_bounds = array<i64: 1, 64>}, {pipeline_mode = #tpu.pipeline_mode<synchronous>, transform_indices = @transform_3, window_bounds = array<i64: 64, 32>}, {pipeline_mode = #tpu.pipeline_mode<synchronous>, transform_indices = @transform_4, window_bounds = array<i64: 1, 32>}, {pipeline_mode = #tpu.pipeline_mode<synchronous>, transform_indices = @transform_5, window_bounds = array<i64: 1, 32>}, {pipeline_mode = #tpu.pipeline_mode<synchronous>, transform_indices = @transform_6, window_bounds = array<i64: 1, 32>}, {transform_indices = @transform_7, window_bounds = array<i64: 8, 32>}]} {
    %c0 = arith.constant 0 : index
    %c0_0 = arith.constant 0 : index
    %0 = vector.load %arg1[%c0, %c0_0] : memref<8x32xf32, #tpu.memory_space<vmem>>, vector<8x32xf32>
    %1 = arith.truncf %0 : vector<8x32xf32> to vector<8x32xbf16>
    %c0_1 = arith.constant 0 : index
    %c0_2 = arith.constant 0 : index
    %2 = vector.load %arg2[%c0_1, %c0_2] : memref<32x64xbf16, #tpu.memory_space<vmem>>, vector<32x64xbf16>
    %cst = arith.constant dense<0.000000e+00> : vector<8x64xf32>
    %3 = tpu.matmul %1, %2, %cst {dimension_numbers = #tpu.dot_dimension_numbers<[1], [0], [0], [1], [0, 0, 1, 1], [], []>} : vector<8x32xbf16>, vector<32x64xbf16>, vector<8x64xf32> -> vector<8x64xf32>
    %c0_3 = arith.constant 0 : index
    %c0_4 = arith.constant 0 : index
    %4 = vector.load %arg3[%c0_3, %c0_4] : memref<1x64xf32, #tpu.memory_space<vmem>>, vector<1x64xf32>
    %5 = vector.broadcast %4 : vector<1x64xf32> to vector<8x64xf32>
    %6 = arith.addf %3, %5 : vector<8x64xf32>
    %cst_5 = arith.constant 0.000000e+00 : f32
    %7 = vector.broadcast %cst_5 : f32 to vector<8x64xf32>
    %8 = arith.maximumf %6, %7 : vector<8x64xf32>
    %9 = arith.truncf %8 : vector<8x64xf32> to vector<8x64xbf16>
    %c0_6 = arith.constant 0 : index
    %c0_7 = arith.constant 0 : index
    %10 = vector.load %arg4[%c0_6, %c0_7] : memref<64x32xbf16, #tpu.memory_space<vmem>>, vector<64x32xbf16>
    %cst_8 = arith.constant dense<0.000000e+00> : vector<8x32xf32>
    %11 = tpu.matmul %9, %10, %cst_8 {dimension_numbers = #tpu.dot_dimension_numbers<[1], [0], [0], [1], [0, 0, 1, 1], [], []>} : vector<8x64xbf16>, vector<64x32xbf16>, vector<8x32xf32> -> vector<8x32xf32>
    %12 = arith.addf %0, %11 : vector<8x32xf32>
    %c0_9 = arith.constant 0 : index
    %c0_10 = arith.constant 0 : index
    %13 = vector.load %arg5[%c0_9, %c0_10] : memref<1x32xf32, #tpu.memory_space<vmem>>, vector<1x32xf32>
    %14 = vector.broadcast %13 : vector<1x32xf32> to vector<8x32xf32>
    %15 = arith.addf %12, %14 : vector<8x32xf32>
    %c0_11 = arith.constant 0 : index
    %c0_12 = arith.constant 0 : index
    %16 = vector.load %arg6[%c0_11, %c0_12] : memref<1x32xf32, #tpu.memory_space<vmem>>, vector<1x32xf32>
    %c0_13 = arith.constant 0 : index
    %c0_14 = arith.constant 0 : index
    %17 = vector.load %arg7[%c0_13, %c0_14] : memref<1x32xf32, #tpu.memory_space<vmem>>, vector<1x32xf32>
    %cst_15 = arith.constant dense<0.000000e+00> : vector<8xf32>
    %18 = vector.multi_reduction <add>, %15, %cst_15 [1] : vector<8x32xf32> to vector<8xf32>
    %19 = vector.shape_cast %18 : vector<8xf32> to vector<8x1xf32>
    %20 = arith.mulf %15, %15 : vector<8x32xf32>
    %cst_16 = arith.constant dense<0.000000e+00> : vector<8xf32>
    %21 = vector.multi_reduction <add>, %20, %cst_16 [1] : vector<8x32xf32> to vector<8xf32>
    %22 = vector.shape_cast %21 : vector<8xf32> to vector<8x1xf32>
    %cst_17 = arith.constant 3.125000e-02 : f32
    %23 = vector.broadcast %cst_17 : f32 to vector<8x1xf32>
    %24 = arith.mulf %19, %23 : vector<8x1xf32>
    %cst_18 = arith.constant 3.125000e-02 : f32
    %25 = vector.broadcast %cst_18 : f32 to vector<8x1xf32>
    %26 = arith.mulf %22, %25 : vector<8x1xf32>
    %27 = arith.mulf %24, %24 : vector<8x1xf32>
    %28 = arith.subf %26, %27 : vector<8x1xf32>
    %cst_19 = arith.constant 9.99999974E-6 : f32
    %29 = vector.broadcast %cst_19 : f32 to vector<8x1xf32>
    %30 = arith.addf %28, %29 : vector<8x1xf32>
    %31 = math.rsqrt %30 : vector<8x1xf32>
    %32 = vector.broadcast %24 : vector<8x1xf32> to vector<8x32xf32>
    %33 = arith.subf %15, %32 : vector<8x32xf32>
    %34 = vector.broadcast %31 : vector<8x1xf32> to vector<8x32xf32>
    %35 = arith.mulf %33, %34 : vector<8x32xf32>
    %36 = vector.broadcast %16 : vector<1x32xf32> to vector<8x32xf32>
    %37 = arith.mulf %35, %36 : vector<8x32xf32>
    %38 = vector.broadcast %17 : vector<1x32xf32> to vector<8x32xf32>
    %39 = arith.addf %37, %38 : vector<8x32xf32>
    %c0_20 = arith.constant 0 : index
    %c0_21 = arith.constant 0 : index
    %40 = vector.load %arg8[%c0_20, %c0_21] : memref<8x32xf32, #tpu.memory_space<vmem>>, vector<8x32xf32>
    tpu.vector_store %arg8[%c0_20, %c0_21], %39 {strides = array<i32>} : memref<8x32xf32, #tpu.memory_space<vmem>>, vector<8x32xf32>,
    return
  }
  func.func @transform_0(%arg0: i32) -> (i32, i32) {
    %c0_i32 = arith.constant 0 : i32
    %c0_i32_0 = arith.constant 0 : i32
    return %arg0, %c0_i32 : i32, i32
  }
  func.func @transform_1(%arg0: i32) -> (i32, i32) {
    %c0_i32 = arith.constant 0 : i32
    %c0_i32_0 = arith.constant 0 : i32
    %c0_i32_1 = arith.constant 0 : i32
    return %c0_i32, %c0_i32_0 : i32, i32
  }
  func.func @transform_2(%arg0: i32) -> (i32, i32) {
    %c0_i32 = arith.constant 0 : i32
    %c0_i32_0 = arith.constant 0 : i32
    %c0_i32_1 = arith.constant 0 : i32
    return %c0_i32, %c0_i32_0 : i32, i32
  }
  func.func @transform_3(%arg0: i32) -> (i32, i32) {
    %c0_i32 = arith.constant 0 : i32
    %c0_i32_0 = arith.constant 0 : i32
    %c0_i32_1 = arith.constant 0 : i32
    return %c0_i32, %c0_i32_0 : i32, i32
  }
  func.func @transform_4(%arg0: i32) -> (i32, i32) {
    %c0_i32 = arith.constant 0 : i32
    %c0_i32_0 = arith.constant 0 : i32
    %c0_i32_1 = arith.constant 0 : i32
    return %c0_i32, %c0_i32_0 : i32, i32
  }
  func.func @transform_5(%arg0: i32) -> (i32, i32) {
    %c0_i32 = arith.constant 0 : i32
    %c0_i32_0 = arith.constant 0 : i32
    %c0_i32_1 = arith.constant 0 : i32
    return %c0_i32, %c0_i32_0 : i32, i32
  }
  func.func @transform_6(%arg0: i32) -> (i32, i32) {
    %c0_i32 = arith.constant 0 : i32
    %c0_i32_0 = arith.constant 0 : i32
    %c0_i32_1 = arith.constant 0 : i32
    return %c0_i32, %c0_i32_0 : i32, i32
  }
  func.func @transform_7(%arg0: i32) -> (i32, i32) {
    %c0_i32 = arith.constant 0 : i32
    %c0_i32_0 = arith.constant 0 : i32
    return %arg0, %c0_i32 : i32, i32
  }
}

module attributes {stable_mosaic.version = 11 : i64} {
  func.func @_ffn_resident_kernel(%arg0: i32, %arg1: memref<8x32xf32, #tpu.memory_space<vmem>>, %arg2: memref<32x64xbf16, #tpu.memory_space<vmem>>, %arg3: memref<1x64xf32, #tpu.memory_space<vmem>>, %arg4: memref<64x32xbf16, #tpu.memory_space<vmem>>, %arg5: memref<1x32xf32, #tpu.memory_space<vmem>>, %arg6: memref<1x32xf32, #tpu.memory_space<vmem>>, %arg7: memref<1x32xf32, #tpu.memory_space<vmem>>, %arg8: memref<8x32xf32, #tpu.memory_space<vmem>>) attributes {dimension_semantics = [#tpu.dimension_semantics<parallel>], iteration_bounds = array<i64: 2>, scalar_prefetch = 0 : i64, scratch_operands = 0 : i64, tpu.core_type = #tpu.core_type<tc>, window_params = [{transform_indices = @transform_0, window_bounds = array<i64: 8, 32>}, {pipeline_mode = #tpu.pipeline_mode<synchronous>, transform_indices = @transform_1, window_bounds = array<i64: 32, 64>}, {pipeline_mode = #tpu.pipeline_mode<synchronous>, transform_indices = @transform_2, window_bounds = array<i64: 1, 64>}, {pipeline_mode = #tpu.pipeline_mode<synchronous>, transform_indices = @transform_3, window_bounds = array<i64: 64, 32>}, {pipeline_mode = #tpu.pipeline_mode<synchronous>, transform_indices = @transform_4, window_bounds = array<i64: 1, 32>}, {pipeline_mode = #tpu.pipeline_mode<synchronous>, transform_indices = @transform_5, window_bounds = array<i64: 1, 32>}, {pipeline_mode = #tpu.pipeline_mode<synchronous>, transform_indices = @transform_6, window_bounds = array<i64: 1, 32>}, {transform_indices = @transform_7, window_bounds = array<i64: 8, 32>}]} {
    %c0 = arith.constant 0 : index
    %c0_0 = arith.constant 0 : index
    %0 = vector.load %arg1[%c0, %c0_0] : memref<8x32xf32, #tpu.memory_space<vmem>>, vector<8x32xf32>
    %1 = arith.truncf %0 : vector<8x32xf32> to vector<8x32xbf16>
    %c0_1 = arith.constant 0 : index
    %c0_2 = arith.constant 0 : index
    %2 = vector.load %arg2[%c0_1, %c0_2] : memref<32x64xbf16, #tpu.memory_space<vmem>>, vector<32x64xbf16>
    %cst = arith.constant dense<0.000000e+00> : vector<8x64xf32>
    %3 = tpu.matmul %1, %2, %cst {dimension_numbers = #tpu.dot_dimension_numbers<[1], [0], [0], [1], [0, 0, 1, 1], [], []>} : vector<8x32xbf16>, vector<32x64xbf16>, vector<8x64xf32> -> vector<8x64xf32>
    %c0_3 = arith.constant 0 : index
    %c0_4 = arith.constant 0 : index
    %4 = vector.load %arg3[%c0_3, %c0_4] : memref<1x64xf32, #tpu.memory_space<vmem>>, vector<1x64xf32>
    %5 = vector.broadcast %4 : vector<1x64xf32> to vector<8x64xf32>
    %6 = arith.addf %3, %5 : vector<8x64xf32>
    %cst_5 = arith.constant 0.000000e+00 : f32
    %7 = vector.broadcast %cst_5 : f32 to vector<8x64xf32>
    %8 = arith.maximumf %6, %7 : vector<8x64xf32>
    %9 = arith.truncf %8 : vector<8x64xf32> to vector<8x64xbf16>
    %c0_6 = arith.constant 0 : index
    %c0_7 = arith.constant 0 : index
    %10 = vector.load %arg4[%c0_6, %c0_7] : memref<64x32xbf16, #tpu.memory_space<vmem>>, vector<64x32xbf16>
    %cst_8 = arith.constant dense<0.000000e+00> : vector<8x32xf32>
    %11 = tpu.matmul %9, %10, %cst_8 {dimension_numbers = #tpu.dot_dimension_numbers<[1], [0], [0], [1], [0, 0, 1, 1], [], []>} : vector<8x64xbf16>, vector<64x32xbf16>, vector<8x32xf32> -> vector<8x32xf32>
    %12 = arith.addf %0, %11 : vector<8x32xf32>
    %c0_9 = arith.constant 0 : index
    %c0_10 = arith.constant 0 : index
    %13 = vector.load %arg5[%c0_9, %c0_10] : memref<1x32xf32, #tpu.memory_space<vmem>>, vector<1x32xf32>
    %14 = vector.broadcast %13 : vector<1x32xf32> to vector<8x32xf32>
    %15 = arith.addf %12, %14 : vector<8x32xf32>
    %c0_11 = arith.constant 0 : index
    %c0_12 = arith.constant 0 : index
    %16 = vector.load %arg6[%c0_11, %c0_12] : memref<1x32xf32, #tpu.memory_space<vmem>>, vector<1x32xf32>
    %c0_13 = arith.constant 0 : index
    %c0_14 = arith.constant 0 : index
    %17 = vector.load %arg7[%c0_13, %c0_14] : memref<1x32xf32, #tpu.memory_space<vmem>>, vector<1x32xf32>
    %cst_15 = arith.constant dense<0.000000e+00> : vector<8xf32>
    %18 = vector.multi_reduction <add>, %15, %cst_15 [1] : vector<8x32xf32> to vector<8xf32>
    %19 = vector.shape_cast %18 : vector<8xf32> to vector<8x1xf32>
    %20 = arith.mulf %15, %15 : vector<8x32xf32>
    %cst_16 = arith.constant dense<0.000000e+00> : vector<8xf32>
    %21 = vector.multi_reduction <add>, %20, %cst_16 [1] : vector<8x32xf32> to vector<8xf32>
    %22 = vector.shape_cast %21 : vector<8xf32> to vector<8x1xf32>
    %cst_17 = arith.constant 3.125000e-02 : f32
    %23 = vector.broadcast %cst_17 : f32 to vector<8x1xf32>
    %24 = arith.mulf %19, %23 : vector<8x1xf32>
    %cst_18 = arith.constant 3.125000e-02 : f32
    %25 = vector.broadcast %cst_18 : f32 to vector<8x1xf32>
    %26 = arith.mulf %22, %25 : vector<8x1xf32>
    %27 = arith.mulf %24, %24 : vector<8x1xf32>
    %28 = arith.subf %26, %27 : vector<8x1xf32>
    %cst_19 = arith.constant 9.99999974E-6 : f32
    %29 = vector.broadcast %cst_19 : f32 to vector<8x1xf32>
    %30 = arith.addf %28, %29 : vector<8x1xf32>
    %31 = math.rsqrt %30 : vector<8x1xf32>
    %32 = vector.broadcast %24 : vector<8x1xf32> to vector<8x32xf32>
    %33 = arith.subf %15, %32 : vector<8x32xf32>
    %34 = vector.broadcast %31 : vector<8x1xf32> to vector<8x32xf32>
    %35 = arith.mulf %33, %34 : vector<8x32xf32>
    %36 = vector.broadcast %16 : vector<1x32xf32> to vector<8x32xf32>
    %37 = arith.mulf %35, %36 : vector<8x32xf32>
    %38 = vector.broadcast %17 : vector<1x32xf32> to vector<8x32xf32>
    %39 = arith.addf %37, %38 : vector<8x32xf32>
    %c0_20 = arith.constant 0 : index
    %c0_21 = arith.constant 0 : index
    %40 = vector.load %arg8[%c0_20, %c0_21] : memref<8x32xf32, #tpu.memory_space<vmem>>, vector<8x32xf32>
    tpu.vector_store %arg8[%c0_20, %c0_21], %39 {strides = array<i32>} : memref<8x32xf32, #tpu.memory_space<vmem>>, vector<8x32xf32>,
    return
  }
  func.func @transform_0(%arg0: i32) -> (i32, i32) {
    %c0_i32 = arith.constant 0 : i32
    %c0_i32_0 = arith.constant 0 : i32
    return %arg0, %c0_i32 : i32, i32
  }
  func.func @transform_1(%arg0: i32) -> (i32, i32) {
    %c0_i32 = arith.constant 0 : i32
    %c0_i32_0 = arith.constant 0 : i32
    %c0_i32_1 = arith.constant 0 : i32
    return %c0_i32, %c0_i32_0 : i32, i32
  }
  func.func @transform_2(%arg0: i32) -> (i32, i32) {
    %c0_i32 = arith.constant 0 : i32
    %c0_i32_0 = arith.constant 0 : i32
    %c0_i32_1 = arith.constant 0 : i32
    return %c0_i32, %c0_i32_0 : i32, i32
  }
  func.func @transform_3(%arg0: i32) -> (i32, i32) {
    %c0_i32 = arith.constant 0 : i32
    %c0_i32_0 = arith.constant 0 : i32
    %c0_i32_1 = arith.constant 0 : i32
    return %c0_i32, %c0_i32_0 : i32, i32
  }
  func.func @transform_4(%arg0: i32) -> (i32, i32) {
    %c0_i32 = arith.constant 0 : i32
    %c0_i32_0 = arith.constant 0 : i32
    %c0_i32_1 = arith.constant 0 : i32
    return %c0_i32, %c0_i32_0 : i32, i32
  }
  func.func @transform_5(%arg0: i32) -> (i32, i32) {
    %c0_i32 = arith.constant 0 : i32
    %c0_i32_0 = arith.constant 0 : i32
    %c0_i32_1 = arith.constant 0 : i32
    return %c0_i32, %c0_i32_0 : i32, i32
  }
  func.func @transform_6(%arg0: i32) -> (i32, i32) {
    %c0_i32 = arith.constant 0 : i32
    %c0_i32_0 = arith.constant 0 : i32
    %c0_i32_1 = arith.constant 0 : i32
    return %c0_i32, %c0_i32_0 : i32, i32
  }
  func.func @transform_7(%arg0: i32) -> (i32, i32) {
    %c0_i32 = arith.constant 0 : i32
    %c0_i32_0 = arith.constant 0 : i32
    return %arg0, %c0_i32 : i32, i32
  }
}

</mosaic_0001>

<bundles_post_ra>
// kernel: tpu_custom_call.1
= control target key start
LH: loop header
LB: loop body
LE: loop exit
PB: predicated region body
PF: predicated region fallthrough
CT: control target
= control target key end

     0   :  { %12 = vsyncpa [#allocation3], 0  ;;  %s861_s0 = inlined_call_operand.vmem [shape: f32[16,32], index: 0, kind: input, shape index: {}]   ;;  %s862_s1 = inlined_call_operand.vmem [shape: bf16[32,64], index: 1, kind: input, shape index: {}]   ;;  %s863_s2 = inlined_call_operand.vmem [shape: f32[1,64], index: 2, kind: input, shape index: {}]   ;;  %s864_s3 = inlined_call_operand.vmem [shape: bf16[64,32], index: 3, kind: input, shape index: {}]   ;;  %s865_s4 = inlined_call_operand.vmem [shape: f32[1,32], index: 4, kind: input, shape index: {}]   ;;  %s866_s5 = inlined_call_operand.vmem [shape: f32[1,32], index: 5, kind: input, shape index: {}]   ;;  %s867_s6 = inlined_call_operand.vmem [shape: f32[1,32], index: 6, kind: input, shape index: {}]   ;;  %s868_s7 = inlined_call_operand.hbm [shape: f32[16,32], index: 7, kind: output, shape index: {}]  }
   0x1   :  { %14 = vsyncpa [#allocation3 + $0x1], 0  ;;  %s740_s24 = smov 0   ;;  %s742_s25 = smov 0  }
   0x2   :  { %s744_s26 = smov 0   ;;  %s746_s27 = smov 0  }
   0x3 LB: > { %s761_s28 = sadd.s32 4294967295, %s695_s27   ;;  %s536_s29 = sadd.s32 4294967294, %s695_s27   ;;  %s695_s27 = sphi %s746_s27, %s874_s27   ;;  %s691_s26 = sphi %s744_s26, %s873_s26   ;;  %s687_s25 = sphi %s742_s25, %s872_s25   ;;  %s683_s24 = sphi %s740_s24, %s871_s24  }
   0x4   : > { %s765_s30 = sadd.s32 1, %s695_s27   ;;  %s179_s8 = sadd.s32 1, %s691_s26 }
   0x5   : > { %s176_s9 = ssub.s32 %s695_s27, %s765_s30  ;;  %p189_p0 = scmp.ne.s32.totalorder %s691_s26, %s687_s25 }
   0x6   : > { %p177_p1 = scmp.eq.s32.totalorder %s176_s9, 0  ;;  %p190_p2 = scmp.eq.s32.totalorder %s761_s28, 1 }
   0x7   : > { %p195_p3 = scmp.ne.s32.totalorder %s687_s25, %s683_s24  ;;  %p196_p4 = scmp.eq.s32.totalorder %s536_s29, 1 }
   0x8   : > { %s776_s10 = scalar_select %p177_p1, %s691_s26, %s179_s8  }
   0x9   : > { %p778_p5 = por %p190_p2, %p189_p0  ;;  %p782_p6 = por %p196_p4, %p195_p3 }
   0xa   : > { %p539_p7 = scmp.ge.s32.totalorder %s695_s27, 1  ;;  %p239_p8 = scmp.lt.s32.totalorder %s695_s27, 3 }
   0xc   : > { %p240_p9 = pnand %p539_p7, %p239_p8 }
   0xd   : > { %p270_p10 = scmp.lt.s32.totalorder (!%p240_p9), %s761_s28, 1  ;;  %s267_s20 = sand.u32 (!%p240_p9), 1, %s687_s25  }
   0xe   : > { %243 = sbr.rel (%p240_p9) target bundleno = 606 (0x25e), region = 48  ;;  %s540_s21 = sshll.u32 (!%p240_p9), %s267_s20, 3 }
   0xf   : > { %s555_s9 = sshll.u32 (!%p240_p9), %s761_s28, 7  ;;  %s269_s13 = scalar_lea.vmem (!%p240_p9), [#allocation2], %s540_s21 }
  0x10   : > { %s477_s14 = sshll.u32 (!%p240_p9), %s269_s13, 4  ;;  %s475_s17 = scalar_lea.hbm (!%p240_p9), %s868_s7, %s555_s9  ;;  %s478_s14 = int_to_ptr.vmem [resolvable:$true] %s477_s14 }
  0x11   : > { %s464_s18 = scalar_lea.sflag (!%p240_p9), [#allocation3], %s267_s20 }
  0x13   : > { %v627_v0 = vld [vmem:[%s862_s1 + $0x8] sm:$0xff]   ;;  %v697_v1 = vmov 0.0   ;;  %v628_v2 = vld [vmem:[%s862_s1] sm:$0xff]   ;;  %vm698_vm0 = vmmov 0   ;;  %v629_v3 = vld [vmem:[%s864_s3 + $0x18] sm:$0xff]   ;;  %s271_s19 = scalar_select %p270_p10, %s761_s28, 1 }
  0x14   : > { %566 = vmatprep.subr.bf16.mxu0 %v697_v1  ;;  %574 = vmatprep.subr.bf16.mxu1 %v697_v1  ;;  %v630_v4 = vld [vmem:[%s864_s3 + $0x10] sm:$0xff]   ;;  %vm300_vm1 = vcmask 261120   ;;  %v631_v7 = vld [vmem:[%s864_s3 + $0x8] sm:$0xff]   ;;  %v632_v8 = vld [vmem:[%s864_s3] sm:$0xff]   ;;  %vm378_vm2 = vcmask 523264  }
  0x15   : > { %567 = vmatpush3.bf16.msra.mxu0 %v627_v0  ;;  %570 = vmatprep.mubr.msk.bf16.mxu0 %vm698_vm0, %v697_v1  ;;  %s541_s22 = sshll.u32 %s271_s19, 3  ;;  %v542_v9 = vld [vmem:[%s863_s2] ss:$0 sm:$0xff]  ;;  %s635_s19 = scalar_lea.vmem %s478_s14, 128 }
  0x16   : > { %568 = vmatprep.subr.bf16.mxu0 %v697_v1  ;;  %582 = vmatprep.mubr.msk.bf16.mxu1 %vm698_vm0, %v697_v1  ;;  %s273_s8 = scalar_lea.vmem %s861_s0, %s541_s22  ;;  %v551_v18 = vld [vmem:[%s865_s4] ss:$0 sm:$0xff]  ;;  %p636_p11 = scmp.ne.s32.totalorder %s478_s14, %s635_s19 }
  0x17   : > { %575 = vmatpush3.bf16.msra.mxu1 %v629_v3  ;;  %v275_v5 = vld [vmem:[%s273_s8] sm:$0xff]  ;;  %s699_s22 = smov [#allocation2]  }
  0x18   : > { %576 = vmatprep.subr.bf16.mxu1 %v697_v1  ;;  %v276_v6 = vpack.c.bf16 %v275_v5, %v275_v5  ;;  %v552_v36 = vld [vmem:[%s866_s5] ss:$0 sm:$0xff]  ;;  %p637_p12 = pnand %p636_p11, %p778_p5  ;;  %s639_s23 = sshll.u32 %s699_s22, 4  ;;  %s640_s23 = int_to_ptr.vmem [resolvable:$false] %s639_s23 }
  0x19   : > { %569 = vmatpush3.bf16.msra.mxu0 %v628_v2  ;;  %v553_v38 = vld [vmem:[%s867_s6] ss:$0 sm:$0xff]  ;;  %s641_s28 = scalar_lea.vmem %s640_s23, 256  ;;  %p642_p0 = scmp.lt.s32.totalorder %s478_s14, %s640_s23 }
  0x1a   : > { %p638_p13 = pneg %p637_p12  ;;  %p643_p1 = scmp.lt.s32.totalorder %s641_s28, %s635_s19 }
  0x1b   : > { %577 = vmatpush3.bf16.msra.mxu1 %v630_v4 }
  0x1c   : > { %578 = vmatprep.subr.bf16.mxu1 %v697_v1  ;;  %571 = vmatmul.mubr.msk.bf16.vlgmr.msra.gmra.mxu0 %vm300_vm1, %v276_v6  ;;  %p644_p2 = por %p643_p1, %p642_p0 }
  0x1e   : > { %p645_p3 = pnand %p644_p2, %p638_p13 }
  0x1f   : > { %579 = vmatpush3.bf16.msra.mxu1 %v631_v7 }
  0x20   : > { %580 = vmatprep.subr.bf16.mxu1 %v697_v1 }
  0x23   : > { %581 = vmatpush3.bf16.msra.mxu1 %v632_v8 }
  0xdc   : > { %v338_v10 = vpop.f32.mrf.mxu0 }
  0xdd   : > { %v339_v11 = vadd.f32 %v542_v9, %v338_v10 }
  0xde   : > { %v572_v12 = vpop.f32.mrf.mxu0 }
  0xdf   : > { %v344_v13 = vmax.f32 %v339_v11, 0.0 }
  0xe0   : > { %v341_v14 = vpop.f32.mrf.mxu0 }
  0xe1   : > { %v345_v15 = vpack.c.bf16 %v344_v13, %v344_v13 }
  0xe2   : > { %v573_v16 = vpop.f32.mrf.mxu0 }
  0xe3   : > { %583 = vmatmul.mubr.msk.bf16.vlgmr.msra.gmra.mxu1 %vm378_vm2, %v345_v15 }
 0x1a3   : > { %v416_v17 = vpop.f32.mrf.mxu1 }
 0x1a4   : > { %v422_v19 = vadd.f32 %v416_v17, %v275_v5 }
 0x1a5   : > { %v584_v20 = vpop.f32.mrf.mxu1 }
 0x1a6   : > { %v430_v21 = vadd.f32 %v551_v18, %v422_v19 }
 0x1a7   : > { %v419_v22 = vpop.f32.mrf.mxu1 }
 0x1a8   : > { %v433_v23 = vsel %vm300_vm1, %v430_v21, 0.0  ;;  %v436_v24 = vmul.f32 %v430_v21, %v430_v21 }
 0x1a9   : > { %434 = vadd.xlane.f32.xlu0 %v433_v23  ;;  %v585_v25 = vpop.f32.mrf.mxu1 }
 0x1aa   : > { %v437_v26 = vsel %vm300_vm1, %v436_v24, 0.0 }
 0x1ad   : > { %438 = vadd.xlane.f32.xlu0 %v437_v26 }
 0x232   : > { %v435_v27 = vpop.xlane.xlu0 %434 }
 0x233   : > { %v440_v28 = vmul.f32 0.03125, %v435_v27 }
 0x235   : > { %v442_v30 = vmul.f32 %v440_v28, %v440_v28  ;;  %v446_v34 = vsub.f32 %v430_v21, %v440_v28 }
 0x236   : > { %v439_v29 = vpop.xlane.xlu0 %438 }
 0x237   : > { %v441_v31 = vmul.f32 0.03125, %v439_v29 }
 0x239   : > { %v443_v32 = vsub.f32 %v441_v31, %v442_v30 }
 0x23b   : > { %v444_v33 = vadd.f32 1e-05, %v443_v32 }
 0x23d   : > { %633 = vrsqrt.f32 %v444_v33 }
 0x24a   : > { %v634_v35 = vpop.eup %633 }
 0x24b   : > { %v447_v37 = vmul.f32 %v634_v35, %v446_v34 }
 0x24d   : > { %v454_v39 = vmul.f32 %v552_v36, %v447_v37 }
 0x24f   : > { %v461_v40 = vadd.f32 %v553_v38, %v454_v39 }
 0x251   : > { %462 = vst.msk [vmem:[%s269_s13] sm:$0xff] %vm300_vm1, %v461_v40 }
 0x252   : > { %648 = shalt.err (!%p645_p3)
}
 0x253   : > { %s649_s21 = scalar_lea.hbm %s475_s17, 128  ;;  %s653_s8 = scalar_lea.hbm %s868_s7, 256 }
 0x254   : > { %p650_p4 = scmp.ne.s32.totalorder %s475_s17, %s649_s21  ;;  %p654_p9 = scmp.lt.s32.totalorder %s475_s17, %s868_s7 }
 0x255   : > { %p655_p10 = scmp.lt.s32.totalorder %s653_s8, %s649_s21 }
 0x256   : > { %p651_p7 = pnand %p650_p4, %p778_p5 }
 0x257   : > { %p656_p11 = por %p655_p10, %p654_p9 }
 0x258   : > { %p652_p8 = pneg %p651_p7 }
 0x25a   : > { %p657_p12 = pnand %p656_p11, %p652_p8 }
 0x25c   : > { %660 = shalt.err (!%p657_p12)
}
 0x25d   : > { %586 = dma.vmem_to_hbm [thread:$0]  (%p778_p5), %s478_s14, 128, %s475_s17, %s464_s18  }
 0x25e PF: > { %p592_p13 = scmp.ge.s32.totalorder %s695_s27, 2  ;;  %s489_s15 = sand.u32 1, %s683_s24  }
 0x25f   : > { %s490_s16 = scalar_lea.sflag [#allocation3], %s489_s15 }
 0x260   : > { %p589_p0 = pnand %p592_p13, %p782_p6 }
 0x262   : > { %p590_p1 = pneg %p589_p0 }
 0x264   : > { %678 = dma.done.wait (%p590_p1), %s490_s16, 128  }
 0x265   : > { %680 = vsyncadd (%p590_p1), %s490_s16, 4294967168  ;;  %p17_p2 = scmp.ge.s32.totalorder %s765_s30, 4   ;;  %s871_s24 = smov %s687_s25 }
 0x266   : > { %s872_s25 = smov %s691_s26  ;;  %s873_s26 = smov %s776_s10 }
 0x267   : > { %s874_s27 = smov %s765_s30  ;;  %19 = sbr.rel (!%p17_p2) target bundleno = 3 (0x3), region = 83 }
 0x26c   :  { %495 = vsyncpa [#allocation3], 1 }
 0x26d   :  { %497 = vsyncpa [#allocation3 + $0x1], 1 }

// kernel: tpu_custom_call.1
= control target key start
LH: loop header
LB: loop body
LE: loop exit
PB: predicated region body
PF: predicated region fallthrough
CT: control target
= control target key end

     0   :  { %12 = vsyncpa [#allocation3], 0  ;;  %s861_s0 = inlined_call_operand.vmem [shape: f32[16,32], index: 0, kind: input, shape index: {}]   ;;  %s862_s1 = inlined_call_operand.vmem [shape: bf16[32,64], index: 1, kind: input, shape index: {}]   ;;  %s863_s2 = inlined_call_operand.vmem [shape: f32[1,64], index: 2, kind: input, shape index: {}]   ;;  %s864_s3 = inlined_call_operand.vmem [shape: bf16[64,32], index: 3, kind: input, shape index: {}]   ;;  %s865_s4 = inlined_call_operand.vmem [shape: f32[1,32], index: 4, kind: input, shape index: {}]   ;;  %s866_s5 = inlined_call_operand.vmem [shape: f32[1,32], index: 5, kind: input, shape index: {}]   ;;  %s867_s6 = inlined_call_operand.vmem [shape: f32[1,32], index: 6, kind: input, shape index: {}]   ;;  %s868_s7 = inlined_call_operand.hbm [shape: f32[16,32], index: 7, kind: output, shape index: {}]  }
   0x1   :  { %14 = vsyncpa [#allocation3 + $0x1], 0  ;;  %s740_s24 = smov 0   ;;  %s742_s25 = smov 0  }
   0x2   :  { %s744_s26 = smov 0   ;;  %s746_s27 = smov 0  }
   0x3 LB: > { %s761_s28 = sadd.s32 4294967295, %s695_s27   ;;  %s536_s29 = sadd.s32 4294967294, %s695_s27   ;;  %s695_s27 = sphi %s746_s27, %s874_s27   ;;  %s691_s26 = sphi %s744_s26, %s873_s26   ;;  %s687_s25 = sphi %s742_s25, %s872_s25   ;;  %s683_s24 = sphi %s740_s24, %s871_s24  }
   0x4   : > { %s765_s30 = sadd.s32 1, %s695_s27   ;;  %s179_s8 = sadd.s32 1, %s691_s26 }
   0x5   : > { %s176_s9 = ssub.s32 %s695_s27, %s765_s30  ;;  %p189_p0 = scmp.ne.s32.totalorder %s691_s26, %s687_s25 }
   0x6   : > { %p177_p1 = scmp.eq.s32.totalorder %s176_s9, 0  ;;  %p190_p2 = scmp.eq.s32.totalorder %s761_s28, 1 }
   0x7   : > { %p195_p3 = scmp.ne.s32.totalorder %s687_s25, %s683_s24  ;;  %p196_p4 = scmp.eq.s32.totalorder %s536_s29, 1 }
   0x8   : > { %s776_s10 = scalar_select %p177_p1, %s691_s26, %s179_s8  }
   0x9   : > { %p778_p5 = por %p190_p2, %p189_p0  ;;  %p782_p6 = por %p196_p4, %p195_p3 }
   0xa   : > { %p539_p7 = scmp.ge.s32.totalorder %s695_s27, 1  ;;  %p239_p8 = scmp.lt.s32.totalorder %s695_s27, 3 }
   0xc   : > { %p240_p9 = pnand %p539_p7, %p239_p8 }
   0xd   : > { %p270_p10 = scmp.lt.s32.totalorder (!%p240_p9), %s761_s28, 1  ;;  %s267_s20 = sand.u32 (!%p240_p9), 1, %s687_s25  }
   0xe   : > { %243 = sbr.rel (%p240_p9) target bundleno = 606 (0x25e), region = 48  ;;  %s540_s21 = sshll.u32 (!%p240_p9), %s267_s20, 3 }
   0xf   : > { %s555_s9 = sshll.u32 (!%p240_p9), %s761_s28, 7  ;;  %s269_s13 = scalar_lea.vmem (!%p240_p9), [#allocation2], %s540_s21 }
  0x10   : > { %s477_s14 = sshll.u32 (!%p240_p9), %s269_s13, 4  ;;  %s475_s17 = scalar_lea.hbm (!%p240_p9), %s868_s7, %s555_s9  ;;  %s478_s14 = int_to_ptr.vmem [resolvable:$true] %s477_s14 }
  0x11   : > { %s464_s18 = scalar_lea.sflag (!%p240_p9), [#allocation3], %s267_s20 }
  0x13   : > { %v627_v0 = vld [vmem:[%s862_s1 + $0x8] sm:$0xff]   ;;  %v697_v1 = vmov 0.0   ;;  %v628_v2 = vld [vmem:[%s862_s1] sm:$0xff]   ;;  %vm698_vm0 = vmmov 0   ;;  %v629_v3 = vld [vmem:[%s864_s3 + $0x18] sm:$0xff]   ;;  %s271_s19 = scalar_select %p270_p10, %s761_s28, 1 }
  0x14   : > { %566 = vmatprep.subr.bf16.mxu0 %v697_v1  ;;  %574 = vmatprep.subr.bf16.mxu1 %v697_v1  ;;  %v630_v4 = vld [vmem:[%s864_s3 + $0x10] sm:$0xff]   ;;  %vm300_vm1 = vcmask 261120   ;;  %v631_v7 = vld [vmem:[%s864_s3 + $0x8] sm:$0xff]   ;;  %v632_v8 = vld [vmem:[%s864_s3] sm:$0xff]   ;;  %vm378_vm2 = vcmask 523264  }
  0x15   : > { %567 = vmatpush3.bf16.msra.mxu0 %v627_v0  ;;  %570 = vmatprep.mubr.msk.bf16.mxu0 %vm698_vm0, %v697_v1  ;;  %s541_s22 = sshll.u32 %s271_s19, 3  ;;  %v542_v9 = vld [vmem:[%s863_s2] ss:$0 sm:$0xff]  ;;  %s635_s19 = scalar_lea.vmem %s478_s14, 128 }
  0x16   : > { %568 = vmatprep.subr.bf16.mxu0 %v697_v1  ;;  %582 = vmatprep.mubr.msk.bf16.mxu1 %vm698_vm0, %v697_v1  ;;  %s273_s8 = scalar_lea.vmem %s861_s0, %s541_s22  ;;  %v551_v18 = vld [vmem:[%s865_s4] ss:$0 sm:$0xff]  ;;  %p636_p11 = scmp.ne.s32.totalorder %s478_s14, %s635_s19 }
  0x17   : > { %575 = vmatpush3.bf16.msra.mxu1 %v629_v3  ;;  %v275_v5 = vld [vmem:[%s273_s8] sm:$0xff]  ;;  %s699_s22 = smov [#allocation2]  }
  0x18   : > { %576 = vmatprep.subr.bf16.mxu1 %v697_v1  ;;  %v276_v6 = vpack.c.bf16 %v275_v5, %v275_v5  ;;  %v552_v36 = vld [vmem:[%s866_s5] ss:$0 sm:$0xff]  ;;  %p637_p12 = pnand %p636_p11, %p778_p5  ;;  %s639_s23 = sshll.u32 %s699_s22, 4  ;;  %s640_s23 = int_to_ptr.vmem [resolvable:$false] %s639_s23 }
  0x19   : > { %569 = vmatpush3.bf16.msra.mxu0 %v628_v2  ;;  %v553_v38 = vld [vmem:[%s867_s6] ss:$0 sm:$0xff]  ;;  %s641_s28 = scalar_lea.vmem %s640_s23, 256  ;;  %p642_p0 = scmp.lt.s32.totalorder %s478_s14, %s640_s23 }
  0x1a   : > { %p638_p13 = pneg %p637_p12  ;;  %p643_p1 = scmp.lt.s32.totalorder %s641_s28, %s635_s19 }
  0x1b   : > { %577 = vmatpush3.bf16.msra.mxu1 %v630_v4 }
  0x1c   : > { %578 = vmatprep.subr.bf16.mxu1 %v697_v1  ;;  %571 = vmatmul.mubr.msk.bf16.vlgmr.msra.gmra.mxu0 %vm300_vm1, %v276_v6  ;;  %p644_p2 = por %p643_p1, %p642_p0 }
  0x1e   : > { %p645_p3 = pnand %p644_p2, %p638_p13 }
  0x1f   : > { %579 = vmatpush3.bf16.msra.mxu1 %v631_v7 }
  0x20   : > { %580 = vmatprep.subr.bf16.mxu1 %v697_v1 }
  0x23   : > { %581 = vmatpush3.bf16.msra.mxu1 %v632_v8 }
  0xdc   : > { %v338_v10 = vpop.f32.mrf.mxu0 }
  0xdd   : > { %v339_v11 = vadd.f32 %v542_v9, %v338_v10 }
  0xde   : > { %v572_v12 = vpop.f32.mrf.mxu0 }
  0xdf   : > { %v344_v13 = vmax.f32 %v339_v11, 0.0 }
  0xe0   : > { %v341_v14 = vpop.f32.mrf.mxu0 }
  0xe1   : > { %v345_v15 = vpack.c.bf16 %v344_v13, %v344_v13 }
  0xe2   : > { %v573_v16 = vpop.f32.mrf.mxu0 }
  0xe3   : > { %583 = vmatmul.mubr.msk.bf16.vlgmr.msra.gmra.mxu1 %vm378_vm2, %v345_v15 }
 0x1a3   : > { %v416_v17 = vpop.f32.mrf.mxu1 }
 0x1a4   : > { %v422_v19 = vadd.f32 %v416_v17, %v275_v5 }
 0x1a5   : > { %v584_v20 = vpop.f32.mrf.mxu1 }
 0x1a6   : > { %v430_v21 = vadd.f32 %v551_v18, %v422_v19 }
 0x1a7   : > { %v419_v22 = vpop.f32.mrf.mxu1 }
 0x1a8   : > { %v433_v23 = vsel %vm300_vm1, %v430_v21, 0.0  ;;  %v436_v24 = vmul.f32 %v430_v21, %v430_v21 }
 0x1a9   : > { %434 = vadd.xlane.f32.xlu0 %v433_v23  ;;  %v585_v25 = vpop.f32.mrf.mxu1 }
 0x1aa   : > { %v437_v26 = vsel %vm300_vm1, %v436_v24, 0.0 }
 0x1ad   : > { %438 = vadd.xlane.f32.xlu0 %v437_v26 }
 0x232   : > { %v435_v27 = vpop.xlane.xlu0 %434 }
 0x233   : > { %v440_v28 = vmul.f32 0.03125, %v435_v27 }
 0x235   : > { %v442_v30 = vmul.f32 %v440_v28, %v440_v28  ;;  %v446_v34 = vsub.f32 %v430_v21, %v440_v28 }
 0x236   : > { %v439_v29 = vpop.xlane.xlu0 %438 }
 0x237   : > { %v441_v31 = vmul.f32 0.03125, %v439_v29 }
 0x239   : > { %v443_v32 = vsub.f32 %v441_v31, %v442_v30 }
 0x23b   : > { %v444_v33 = vadd.f32 1e-05, %v443_v32 }
 0x23d   : > { %633 = vrsqrt.f32 %v444_v33 }
 0x24a   : > { %v634_v35 = vpop.eup %633 }
 0x24b   : > { %v447_v37 = vmul.f32 %v634_v35, %v446_v34 }
 0x24d   : > { %v454_v39 = vmul.f32 %v552_v36, %v447_v37 }
 0x24f   : > { %v461_v40 = vadd.f32 %v553_v38, %v454_v39 }
 0x251   : > { %462 = vst.msk [vmem:[%s269_s13] sm:$0xff] %vm300_vm1, %v461_v40 }
 0x252   : > { %648 = shalt.err (!%p645_p3)
}
 0x253   : > { %s649_s21 = scalar_lea.hbm %s475_s17, 128  ;;  %s653_s8 = scalar_lea.hbm %s868_s7, 256 }
 0x254   : > { %p650_p4 = scmp.ne.s32.totalorder %s475_s17, %s649_s21  ;;  %p654_p9 = scmp.lt.s32.totalorder %s475_s17, %s868_s7 }
 0x255   : > { %p655_p10 = scmp.lt.s32.totalorder %s653_s8, %s649_s21 }
 0x256   : > { %p651_p7 = pnand %p650_p4, %p778_p5 }
 0x257   : > { %p656_p11 = por %p655_p10, %p654_p9 }
 0x258   : > { %p652_p8 = pneg %p651_p7 }
 0x25a   : > { %p657_p12 = pnand %p656_p11, %p652_p8 }
 0x25c   : > { %660 = shalt.err (!%p657_p12)
}
 0x25d   : > { %586 = dma.vmem_to_hbm [thread:$0]  (%p778_p5), %s478_s14, 128, %s475_s17, %s464_s18  }
 0x25e PF: > { %p592_p13 = scmp.ge.s32.totalorder %s695_s27, 2  ;;  %s489_s15 = sand.u32 1, %s683_s24  }
 0x25f   : > { %s490_s16 = scalar_lea.sflag [#allocation3], %s489_s15 }
 0x260   : > { %p589_p0 = pnand %p592_p13, %p782_p6 }
 0x262   : > { %p590_p1 = pneg %p589_p0 }
 0x264   : > { %678 = dma.done.wait (%p590_p1), %s490_s16, 128  }
 0x265   : > { %680 = vsyncadd (%p590_p1), %s490_s16, 4294967168  ;;  %p17_p2 = scmp.ge.s32.totalorder %s765_s30, 4   ;;  %s871_s24 = smov %s687_s25 }
 0x266   : > { %s872_s25 = smov %s691_s26  ;;  %s873_s26 = smov %s776_s10 }
 0x267   : > { %s874_s27 = smov %s765_s30  ;;  %19 = sbr.rel (!%p17_p2) target bundleno = 3 (0x3), region = 83 }
 0x26c   :  { %495 = vsyncpa [#allocation3], 1 }
 0x26d   :  { %497 = vsyncpa [#allocation3 + $0x1], 1 }

</bundles_post_ra>
